<compile_context>
chip_gen: v7x
topology: tpu7x:2x2x1
jax: 0.10.0
libtpu: 0.0.40
codegen_flags: <defaults>
</compile_context>

<pallas_src>
import functools

import jax
import jax.numpy as jnp
from jax.experimental import pallas as pl
from jax.experimental.pallas import tpu as pltpu


def _channel_attention_kernel(x_ref, w1t_ref, w2t_ref, out_ref, acc_ref, *,
                              inv_hw, hw_tail):
    # x_ref   : (Nb, C, HW_TILE)  tile of the flattened input (tail lanes undefined)
    # w1t_ref : (C, mip)          fc1 weight, transposed for row-major matmul
    # w2t_ref : (mip, C)          fc2 weight, transposed for row-major matmul
    # out_ref : (Nb, 1, C)        per-batch-block output (resident across HW axis)
    # acc_ref : (Nb, C) f32       channel-sum accumulator (VMEM scratch)
    # hw_tail : static int; number of valid lanes in the LAST hw tile (0 => all valid)
    h_idx = pl.program_id(1)
    last_h = pl.num_programs(1) - 1

    @pl.when(h_idx == 0)
    def _():
        acc_ref[...] = jnp.zeros_like(acc_ref)

    if hw_tail:
        # Tail exists (grid has >= 2 hw steps): mask only on the last step so the
        # VPU select cost isn't paid on every full tile.
        @pl.when(h_idx != last_h)
        def _():
            acc_ref[...] += jnp.sum(x_ref[...], axis=-1, dtype=jnp.float32)

        @pl.when(h_idx == last_h)
        def _():
            lane = jax.lax.broadcasted_iota(jnp.int32, (1, 1, x_ref.shape[-1]), 2)
            xm = jnp.where(lane < hw_tail, x_ref[...], 0)
            acc_ref[...] += jnp.sum(xm, axis=-1, dtype=jnp.float32)
    else:
        acc_ref[...] += jnp.sum(x_ref[...], axis=-1, dtype=jnp.float32)

    @pl.when(h_idx == last_h)
    def _():
        pooled = acc_ref[...] * jnp.float32(inv_hw)           # divide by TRUE H*W
        h = jnp.dot(pooled, w1t_ref[...],
                    preferred_element_type=jnp.float32)        # (Nb, mip)  fc1
        h = jnp.maximum(h, 0.0)                                # ReLU
        y = jnp.dot(h, w2t_ref[...],
                    preferred_element_type=jnp.float32)        # (Nb, C)    fc2
        att = jax.nn.sigmoid(y).astype(out_ref.dtype)
        out_ref[...] = att[:, None, :]                         # -> (Nb, 1, C)


def channel_attention(x, w1, w2, *, nb=8, hw_tile=4096):
    """x: (N, C, H, W) NCHW; w1: (mip, C, 1, 1); w2: (C, mip, 1, 1). Returns (N, C, 1, 1)."""
    N, C, H, W = x.shape
    mip = w1.shape[0]
    HW = H * W
    itemsize = x.dtype.itemsize

    # --- batch blocking: no padding; guarantee >= 2 batch blocks when N >= 2 so that
    #     v7x's two TensorCores both get work on the "parallel" axis.
    if N >= 2 * nb:
        Nb = nb
    elif N >= 2:
        Nb = -(-N // 2)          # ceil(N/2) -> exactly 2 batch blocks
    else:
        Nb = 1

    # --- HW tiling: full-extent if it fits one tile, else 128-lane-multiple tiles with
    #     an in-kernel mask on the tail (no host-side padding copy).
    HW_TILE = HW if HW <= hw_tile else hw_tile          # hw_tile is a multiple of 128
    n_hw = pl.cdiv(HW, HW_TILE)
    hw_tail = HW - (n_hw - 1) * HW_TILE
    if hw_tail == HW_TILE:
        hw_tail = 0                                      # evenly divides: no mask needed

    x_flat = x.reshape(N, C, HW)                         # metadata reshape, no copy
    w1t = w1.reshape(mip, C).T                           # (C, mip)
    w2t = w2.reshape(C, mip).T                           # (mip, C)

    grid = (pl.cdiv(N, Nb), n_hw)

    # VMEM budget: x block is double-buffered; raise the scoped limit explicitly so the
    # larger default tile also works under v5e's 16 MiB / v6e-v7x's 32 MiB defaults.
    x_block_bytes = Nb * C * HW_TILE * itemsize
    vmem_limit = max(32 * 1024 * 1024, 2 * x_block_bytes + 4 * 1024 * 1024)

    kernel = functools.partial(_channel_attention_kernel,
                               inv_hw=1.0 / HW, hw_tail=hw_tail)

    cost = pl.CostEstimate(
        flops=N * C * HW + 2 * N * C * mip + 2 * N * mip * C + 5 * N * C,
        transcendentals=N * C,
        bytes_accessed=N * C * HW * itemsize + 2 * C * mip * 4 + N * C * itemsize,
    )

    out = pl.pallas_call(
        kernel,
        out_shape=jax.ShapeDtypeStruct((N, 1, C), x.dtype),
        grid_spec=pltpu.PrefetchScalarGridSpec(
            num_scalar_prefetch=0,
            grid=grid,
            in_specs=[
                pl.BlockSpec((Nb, C, HW_TILE), lambda b, h: (b, 0, h)),
                pl.BlockSpec((C, mip), lambda b, h: (0, 0)),
                pl.BlockSpec((mip, C), lambda b, h: (0, 0)),
            ],
            # Per-batch-block output; constant index over the HW (reduction) axis so the
            # block stays resident and is written once on the last HW step.  The size-1
            # middle dim keeps the (8,128) block constraint satisfied for any Nb.
            out_specs=pl.BlockSpec((Nb, 1, C), lambda b, h: (b, 0, 0)),
            scratch_shapes=[pltpu.VMEM((Nb, C), jnp.float32)],
        ),
        compiler_params=pltpu.CompilerParams(
            dimension_semantics=("parallel", "arbitrary"),
            vmem_limit_bytes=vmem_limit,
        ),
        cost_estimate=cost,
    )(x_flat, w1t, w2t)

    return out.reshape(N, C, 1, 1)


def _reference(x, w1, w2):
    # Pure-JAX reference of the PyTorch forward.
    N, C, H, W = x.shape
    mip = w1.shape[0]
    pooled = jnp.mean(x.astype(jnp.float32), axis=(2, 3))        # (N, C)
    h = jnp.maximum(pooled @ w1.reshape(mip, C).T, 0.0)          # (N, mip)
    y = jax.nn.sigmoid(h @ w2.reshape(C, mip).T)                 # (N, C)
    return y.astype(x.dtype).reshape(N, C, 1, 1)


def _run_case(key, N, in_planes, ratio, H, W):
    mip = min(8, in_planes // ratio)
    kx, k1, k2 = jax.random.split(key, 3)
    x = jax.random.normal(kx, (N, in_planes, H, W), dtype=jnp.float32)
    w1 = jax.random.normal(k1, (mip, in_planes, 1, 1), dtype=jnp.float32) * (1.0 / in_planes ** 0.5)
    w2 = jax.random.normal(k2, (in_planes, mip, 1, 1), dtype=jnp.float32) * (1.0 / mip ** 0.5)

    out = channel_attention(x, w1, w2)
    out = jax.block_until_ready(out)

    ref = _reference(x, w1, w2)
    assert out.shape == (N, in_planes, 1, 1), out.shape
    err = float(jnp.max(jnp.abs(out - ref)))
    assert jnp.allclose(out, ref, atol=1e-5, rtol=1e-5), err


if __name__ == "__main__":
    key = jax.random.PRNGKey(0)
    k_small, k_big = jax.random.split(key)

    # Module config: in_planes=64, ratio=16 -> mip = min(8, 64 // 16) = 4
    # Primary small case: N=2 -> Nb=1 with 2 "parallel" batch blocks; single HW tile.
    _run_case(k_small, N=2, in_planes=64, ratio=16, H=16, W=16)

    # Secondary case: N=5 -> Nb=3 with a clipped batch tail block (no host padding),
    # HW=5184 -> two HW tiles (4096 + masked 1088-lane tail).
    _run_case(k_big, N=5, in_planes=64, ratio=16, H=72, W=72)

    print("KERNEL_OK")
</pallas_src>

<mosaic_0001>
module attributes {stable_mosaic.version = 11 : i64} {
  func.func @_channel_attention_kernel(%arg0: i32, %arg1: i32, %arg2: memref<1x64x256xf32, #tpu.memory_space<vmem>>, %arg3: memref<64x4xf32, #tpu.memory_space<vmem>>, %arg4: memref<4x64xf32, #tpu.memory_space<vmem>>, %arg5: memref<1x1x64xf32, #tpu.memory_space<vmem>>, %arg6: memref<1x64xf32, #tpu.memory_space<vmem>>) attributes {dimension_semantics = [#tpu.dimension_semantics<parallel>, #tpu.dimension_semantics<arbitrary>], iteration_bounds = array<i64: 2, 1>, scalar_prefetch = 0 : i64, scratch_operands = 1 : i64, tpu.core_type = #tpu.core_type<tc>, window_params = [{transform_indices = @transform_0, window_bounds = array<i64: 1, 64, 256>}, {pipeline_mode = #tpu.pipeline_mode<synchronous>, transform_indices = @transform_1, window_bounds = array<i64: 64, 4>}, {pipeline_mode = #tpu.pipeline_mode<synchronous>, transform_indices = @transform_2, window_bounds = array<i64: 4, 64>}, {transform_indices = @transform_3, window_bounds = array<i64: 1, 1, 64>}]} {
    %c0_i32 = arith.constant 0 : i32
    %0 = arith.cmpi eq, %arg1, %c0_i32 : i32
    %1 = arith.extui %0 : i1 to i32
    %c0_i32_0 = arith.constant 0 : i32
    %2 = arith.cmpi ne, %1, %c0_i32_0 : i32
    scf.if %2 {
      %cst_9 = arith.constant 0.000000e+00 : f32
      %11 = vector.broadcast %cst_9 : f32 to vector<1x64xf32>
      %c0_10 = arith.constant 0 : index
      %c0_11 = arith.constant 0 : index
      %12 = vector.load %arg6[%c0_10, %c0_11] : memref<1x64xf32, #tpu.memory_space<vmem>>, vector<1x64xf32>
      tpu.vector_store %arg6[%c0_10, %c0_11], %11 {strides = array<i32>} : memref<1x64xf32, #tpu.memory_space<vmem>>, vector<1x64xf32>,
    } else {
    }
    %c0 = arith.constant 0 : index
    %c0_1 = arith.constant 0 : index
    %3 = vector.load %arg6[%c0, %c0_1] : memref<1x64xf32, #tpu.memory_space<vmem>>, vector<1x64xf32>
    %c0_2 = arith.constant 0 : index
    %c0_3 = arith.constant 0 : index
    %c0_4 = arith.constant 0 : index
    %4 = vector.load %arg2[%c0_2, %c0_3, %c0_4] : memref<1x64x256xf32, #tpu.memory_space<vmem>>, vector<1x64x256xf32>
    %cst = arith.constant dense<0.000000e+00> : vector<1x64xf32>
    %5 = vector.multi_reduction <add>, %4, %cst [2] : vector<1x64x256xf32> to vector<1x64xf32>
    %6 = arith.addf %3, %5 : vector<1x64xf32>
    %c0_5 = arith.constant 0 : index
    %c0_6 = arith.constant 0 : index
    %7 = vector.load %arg6[%c0_5, %c0_6] : memref<1x64xf32, #tpu.memory_space<vmem>>, vector<1x64xf32>
    tpu.vector_store %arg6[%c0_5, %c0_6], %6 {strides = array<i32>} : memref<1x64xf32, #tpu.memory_space<vmem>>, vector<1x64xf32>,
    %c0_i32_7 = arith.constant 0 : i32
    %8 = arith.cmpi eq, %arg1, %c0_i32_7 : i32
    %9 = arith.extui %8 : i1 to i32
    %c0_i32_8 = arith.constant 0 : i32
    %10 = arith.cmpi ne, %9, %c0_i32_8 : i32
    scf.if %10 {
      %c0_9 = arith.constant 0 : index
      %c0_10 = arith.constant 0 : index
      %11 = vector.load %arg6[%c0_9, %c0_10] : memref<1x64xf32, #tpu.memory_space<vmem>>, vector<1x64xf32>
      %cst_11 = arith.constant 3.906250e-03 : f32
      %12 = vector.broadcast %cst_11 : f32 to vector<1x64xf32>
      %13 = arith.mulf %11, %12 : vector<1x64xf32>
      %c0_12 = arith.constant 0 : index
      %c0_13 = arith.constant 0 : index
      %14 = vector.load %arg3[%c0_12, %c0_13] : memref<64x4xf32, #tpu.memory_space<vmem>>, vector<64x4xf32>
      %cst_14 = arith.constant dense<0.000000e+00> : vector<1x4xf32>
      %15 = tpu.matmul %13, %14, %cst_14 {dimension_numbers = #tpu.dot_dimension_numbers<[1], [0], [0], [1], [0, 0, 1, 1], [], []>} : vector<1x64xf32>, vector<64x4xf32>, vector<1x4xf32> -> vector<1x4xf32>
      %cst_15 = arith.constant 0.000000e+00 : f32
      %16 = vector.broadcast %cst_15 : f32 to vector<1x4xf32>
      %17 = arith.maximumf %15, %16 : vector<1x4xf32>
      %c0_16 = arith.constant 0 : index
      %c0_17 = arith.constant 0 : index
      %18 = vector.load %arg4[%c0_16, %c0_17] : memref<4x64xf32, #tpu.memory_space<vmem>>, vector<4x64xf32>
      %cst_18 = arith.constant dense<0.000000e+00> : vector<1x64xf32>
      %19 = tpu.matmul %17, %18, %cst_18 {dimension_numbers = #tpu.dot_dimension_numbers<[1], [0], [0], [1], [0, 0, 1, 1], [], []>} : vector<1x4xf32>, vector<4x64xf32>, vector<1x64xf32> -> vector<1x64xf32>
      %20 = arith.negf %19 : vector<1x64xf32>
      %21 = math.exp %20 : vector<1x64xf32>
      %cst_19 = arith.constant 1.000000e+00 : f32
      %22 = vector.broadcast %cst_19 : f32 to vector<1x64xf32>
      %23 = arith.addf %22, %21 : vector<1x64xf32>
      %24 = arith.divf %22, %23 : vector<1x64xf32>
      %25 = vector.shape_cast %24 : vector<1x64xf32> to vector<1x1x64xf32>
      %c0_20 = arith.constant 0 : index
      %c0_21 = arith.constant 0 : index
      %c0_22 = arith.constant 0 : index
      %26 = vector.load %arg5[%c0_20, %c0_21, %c0_22] : memref<1x1x64xf32, #tpu.memory_space<vmem>>, vector<1x1x64xf32>
      tpu.vector_store %arg5[%c0_20, %c0_21, %c0_22], %25 {strides = array<i32>} : memref<1x1x64xf32, #tpu.memory_space<vmem>>, vector<1x1x64xf32>,
    } else {
    }
    return
  }
  func.func @transform_0(%arg0: i32, %arg1: i32) -> (i32, i32, i32) {
    %c0_i32 = arith.constant 0 : i32
    %c0_i32_0 = arith.constant 0 : i32
    return %arg0, %c0_i32, %arg1 : i32, i32, i32
  }
  func.func @transform_1(%arg0: i32, %arg1: i32) -> (i32, i32) {
    %c0_i32 = arith.constant 0 : i32
    %c0_i32_0 = arith.constant 0 : i32
    %c0_i32_1 = arith.constant 0 : i32
    return %c0_i32, %c0_i32_0 : i32, i32
  }
  func.func @transform_2(%arg0: i32, %arg1: i32) -> (i32, i32) {
    %c0_i32 = arith.constant 0 : i32
    %c0_i32_0 = arith.constant 0 : i32
    %c0_i32_1 = arith.constant 0 : i32
    return %c0_i32, %c0_i32_0 : i32, i32
  }
  func.func @transform_3(%arg0: i32, %arg1: i32) -> (i32, i32, i32) {
    %c0_i32 = arith.constant 0 : i32
    %c0_i32_0 = arith.constant 0 : i32
    %c0_i32_1 = arith.constant 0 : i32
    return %arg0, %c0_i32, %c0_i32_0 : i32, i32, i32
  }
}

</mosaic_0001>

<bundles_post_ra>
// kernel: tpu_custom_call.1
= control target key start
LH: loop header
LB: loop body
LE: loop exit
PB: predicated region body
PF: predicated region fallthrough
CT: control target
= control target key end

     0   :  { %8 = vsyncpa [#allocation4], 0  ;;  %s1908_s0 = inlined_call_operand.hbm [shape: f32[2,64,256], index: 0, kind: input, shape index: {}]   ;;  %s1909_s1 = inlined_call_operand.vmem [shape: f32[64,4], index: 1, kind: input, shape index: {}]   ;;  %s1910_s2 = inlined_call_operand.vmem [shape: f32[4,64], index: 2, kind: input, shape index: {}]   ;;  %s1911_s3 = inlined_call_operand.hbm [shape: f32[2,1,64], index: 3, kind: output, shape index: {}]  }
   0x1   :  { %10 = vsyncpa [#allocation4 + $0x1], 0 }
   0x2   :  { %11 = vsyncpa [#allocation5], 0 }
   0x3   :  { %13 = vsyncpa [#allocation5 + $0x1], 0  ;;  %s1551_s12 = smov 0   ;;  %s1553_s13 = smov 0  }
   0x4   :  { %s1555_s14 = smov 0   ;;  %s1557_s15 = smov 0  }
   0x5   :  { %s1559_s16 = smov 0   ;;  %s1561_s17 = smov 0  }
   0x6 LB: > { %s1269_s18 = sadd.s32 4294967295, %s1520_s17   ;;  %s1270_s19 = sadd.s32 4294967294, %s1520_s17   ;;  %s1520_s17 = sphi %s1561_s17, %s19_s17   ;;  %s1516_s16 = sphi %s1559_s16, %s1926_s16   ;;  %s1512_s15 = sphi %s1557_s15, %s1925_s15   ;;  %s1508_s14 = sphi %s1555_s14, %s1924_s14   ;;  %s1504_s13 = sphi %s1553_s13, %s1923_s13   ;;  %s1500_s12 = sphi %s1551_s12, %s1922_s12  }
   0x7   : > { %s31_s20 = sadd.s32 1, %s1516_s16  ;;  %s40_s21 = sadd.s32 1, %s1508_s14 }
   0x8   : > { %p33_p0 = scmp.ge.s32.totalorder %s31_s20, 2  ;;  %p47_p1 = scmp.ne.s32.totalorder %s1508_s14, %s1504_s13 }
   0x9   : > { %p48_p2 = scmp.eq.s32.totalorder %s1520_s17, 0  ;;  %p53_p3 = scmp.ne.s32.totalorder %s1504_s13, %s1500_s12 }
   0xa   : > { %s1928_s20 = smov (%p33_p0, %s31_s20), 0  ;;  %p54_p5 = scmp.eq.s32.totalorder %s1269_s18, 0 }
   0xb   : > { %p1592_p4 = por %p48_p2, %p47_p1  ;;  %s35_s23 = ssub.s32 %s1516_s16, %s1928_s20 }
   0xc   : > { %p119_p6 = scmp.eq.s32.totalorder %s1269_s18, 1  ;;  %p38_p7 = scmp.eq.s32.totalorder %s35_s23, 0 }
   0xd   : > { %p1598_p8 = por %p54_p5, %p53_p3  ;;  %p125_p10 = scmp.eq.s32.totalorder %s1270_s19, 1 }
   0xe   : > { %p1602_p9 = por %p119_p6, %p47_p1  ;;  %p1345_p13 = scmp.lt.s32.totalorder %s1520_s17, 2 }
   0xf   : > { %s1607_s26 = scalar_select %p38_p7, %s1508_s14, %s40_s21  }
  0x10   : > { %s1915_s25 = scalar_select %p1602_p9, 1, 0 }
  0x11   : > { %p1609_p11 = por %p125_p10, %p53_p3  ;;  %s151_s28 = sand.u32 1, %s1508_s14  }
  0x12   : > { %s1273_s29 = sshll.u32 %s151_s28, 7  ;;  %s1285_s30 = sshll.u32 %s1516_s16, 11 }
  0x13   : > { %s1916_s27 = scalar_select %p1609_p11, 1, 0 }
  0x14   : > { %s1620_s6 = scalar_lea.hbm %s1908_s0, %s1285_s30  ;;  %s155_s7 = scalar_lea.vmem [#allocation3], %s1273_s29 }
  0x15   : > { %s164_s8 = sshll.u32 %s155_s7, 4  ;;  %p1626_p0 = pnand %p1345_p13, %p1592_p4  ;;  %s1622_s8 = int_to_ptr.vmem [resolvable:$true] %s164_s8 }
  0x16   : > { %s1631_s10 = scalar_lea.sflag [#allocation4], %s151_s28  ;;  %s1408_s11 = scalar_lea.hbm %s1620_s6, 2048 }
  0x17   : > { %p1409_p2 = scmp.ne.s32.totalorder %s1620_s6, %s1408_s11  ;;  %p1410_p3 = pneg %p1626_p0 }
  0x18   : > { %s1413_s21 = scalar_lea.hbm %s1908_s0, 4096  ;;  %p1414_p4 = scmp.lt.u32.totalorder %s1620_s6, %s1908_s0 }
  0x19   : > { %p1411_p5 = pnand %p1410_p3, %p1409_p2  ;;  %p1415_p7 = scmp.lt.u32.totalorder %s1413_s21, %s1408_s11 }
  0x1a   : > { %p1417_p13 = scmp.lt.u32.totalorder %s1408_s11, %s1620_s6 }
  0x1b   : > { %p1412_p6 = pneg %p1411_p5  ;;  %p1416_p10 = por %p1415_p7, %p1414_p4 }
  0x1d   : > { %p1418_p12 = por %p1417_p13, %p1416_p10 }
  0x1f   : > { %p1419_p1 = pnand %p1418_p12, %p1412_p6 }
  0x21   : > { %1422 = shalt.err (!%p1419_p1)
}
  0x22   : > { %s1423_s28 = scalar_lea.vmem %s1622_s8, 2048  ;;  %s1522_s29 = smov [#allocation3]  }
  0x23   : > { %p1424_p2 = scmp.ne.s32.totalorder %s1622_s8, %s1423_s28  ;;  %s1428_s30 = sshll.u32 %s1522_s29, 4  ;;  %s1429_s30 = int_to_ptr.vmem [resolvable:$false] %s1428_s30 }
  0x24   : > { %s1430_s4 = scalar_lea.vmem %s1429_s30, 4096  ;;  %p1431_p9 = scmp.lt.s32.totalorder %s1622_s8, %s1429_s30 }
  0x25   : > { %p1426_p5 = pnand %p1424_p2, %p1410_p3  ;;  %p1432_p4 = scmp.lt.s32.totalorder %s1430_s4, %s1423_s28 }
  0x27   : > { %p1427_p11 = pneg %p1426_p5  ;;  %p1433_p7 = por %p1432_p4, %p1431_p9 }
  0x29   : > { %p1434_p10 = pnand %p1433_p7, %p1427_p11 }
  0x2b   : > { %1437 = shalt.err (!%p1434_p10)
}
  0x2c   : > { %s1523_s5 = smov 256   ;;  %s1524_s7 = smov 16  }
  0x2d   : > { %1340 = dma.hbm_to_vmem [thread:$0]  (!%p1626_p0), %s1620_s6, 2048, %s1622_s8, %s1631_s10, %s1523_s5, %s1523_s5, %s1524_s7  }
  0x2e   : > { %p172_p12 = scmp.lt.s32.totalorder %s1520_s17, 3  ;;  %p1918_p1 = scmp.ge.s32.totalorder %s1520_s17, 1 }
  0x30   : > { %p173_p3 = pnand %p1918_p1, %p172_p12 }
  0x31   : > { %s1663_s11 = sand.u32 (!%p173_p3), 1, %s1504_s13  }
  0x32   : > { %176 = sbr.rel (%p173_p3) target bundleno = 865 (0x361), region = 32  ;;  %s1277_s18 = sshll.u32 (!%p173_p3), %s1663_s11, 7 }
  0x33   : > { %s179_s19 = scalar_lea.sflag (!%p173_p3), [#allocation4], %s1663_s11  ;;  %s182_s21 = scalar_lea.vmem (!%p173_p3), [#allocation3], %s1277_s18 }
  0x39   : > { %1491 = dma.done.wait (%p1598_p8), %s179_s19, 2048  }
  0x3a   : > { %1493 = vsyncadd (%p1598_p8), %s179_s19, 4294965248  ;;  %v212_v0 = vld [vmem:[%s182_s21] sm:$0xff]  ;;  %v213_v1 = vld [vmem:[%s182_s21 + $0x8] sm:$0xff]  ;;  %v1525_v24 = vmov 0   ;;  %v260_v25 = vlaneseq  ;;  %v1526_v26 = vmov 1966171168  }
  0x3b   : > { %v214_v2 = vld [vmem:[%s182_s21 + $0x10] sm:$0xff]  ;;  %v228_v3 = vadd.f32 %v213_v1, %v212_v0  ;;  %v215_v4 = vld [vmem:[%s182_s21 + $0x18] sm:$0xff]  ;;  %v216_v5 = vld [vmem:[%s182_s21 + $0x20] sm:$0xff]  ;;  %1402 = vset.pattern.permute.xlu0 %v1525_v24  ;;  %1403 = vset.pattern.permute.xlu1 %v1525_v24  ;;  %v521_v27 = vunpack.c.l.s4 %v1526_v26  ;;  %vm209_vm0 = vcmask 516096   ;;  %vm1529_vm1 = vmmov 0   ;;  %s1282_s8 = sshll.u32 %s1512_s15, 4 }
  0x3c   : > { %v217_v6 = vld [vmem:[%s182_s21 + $0x28] sm:$0xff]  ;;  %v218_v8 = vld [vmem:[%s182_s21 + $0x30] sm:$0xff]  ;;  %v219_v9 = vld [vmem:[%s182_s21 + $0x38] sm:$0xff]  ;;  %v231_v10 = vadd.f32 %v215_v4, %v214_v2  ;;  %v1672_v28 = vshrl.u32 %v260_v25, 7  ;;  %vm943_vm2 = vcmask 130112   ;;  %vm950_vm3 = vcmask 195712   ;;  %s1858_s28 = scalar_lea.hbm %s1911_s3, %s1282_s8 }
  0x3d   : > { %v234_v7 = vadd.f32 %v217_v6, %v216_v5  ;;  %229 = vadd.xlane.f32.xlu0 %v228_v3  ;;  %v237_v11 = vadd.f32 %v219_v9, %v218_v8  ;;  %v220_v12 = vld [vmem:[%s182_s21 + $0x40] sm:$0xff]  ;;  %v221_v13 = vld [vmem:[%s182_s21 + $0x48] sm:$0xff]  ;;  %v222_v14 = vld [vmem:[%s182_s21 + $0x50] sm:$0xff]  ;;  %v522_v29 = vunpack.c.0.s8 %v521_v27  ;;  %vm957_vm4 = vcmask 261312   ;;  %s203_s9 = scalar_lea.vmem [#allocation6], %s1663_s11  ;;  %s1180_s29 = scalar_lea.sflag [#allocation5], %s1663_s11 }
  0x3e   : > { %v223_v15 = vld [vmem:[%s182_s21 + $0x58] sm:$0xff]  ;;  %v240_v16 = vadd.f32 %v221_v13, %v220_v12  ;;  %v224_v18 = vld [vmem:[%s182_s21 + $0x60] sm:$0xff]  ;;  %v225_v19 = vld [vmem:[%s182_s21 + $0x68] sm:$0xff]  ;;  %v1675_v30 = vsub.s32 0, %v1672_v28  ;;  %v1678_v31 = vsub.s32 1, %v1672_v28  ;;  %v1681_v32 = vsub.s32 2, %v1672_v28 }
  0x3f   : > { %235 = vadd.xlane.f32.xlu1 %v234_v7  ;;  %v243_v17 = vadd.f32 %v223_v15, %v222_v14  ;;  %v226_v20 = vld [vmem:[%s182_s21 + $0x70] sm:$0xff]  ;;  %v227_v21 = vld [vmem:[%s182_s21 + $0x78] sm:$0xff]  ;;  %v246_v22 = vadd.f32 %v225_v19, %v224_v18  ;;  %v1684_v33 = vsub.s32 3, %v1672_v28  ;;  %v1687_v34 = vsub.s32 4, %v1672_v28  ;;  %s1192_s10 = sshll.u32 %s203_s9, 4  ;;  %p1919_p9 = scmp.ne.s32.totalorder %s1915_s25, 0  ;;  %s1860_s10 = int_to_ptr.vmem [resolvable:$true] %s1192_s10 }
  0x40   : > { %v249_v23 = vadd.f32 %v227_v21, %v226_v20  ;;  %v1690_v35 = vsub.s32 5, %v1672_v28  ;;  %v1693_v36 = vsub.s32 6, %v1672_v28  ;;  %v1696_v37 = vsub.s32 7, %v1672_v28  ;;  %s1438_s30 = scalar_lea.vmem %s1860_s10, 16  ;;  %s1530_s15 = smov [#allocation6]  }
  0x41   : > { %232 = vadd.xlane.f32.xlu0 %v231_v10  ;;  %v1699_v39 = vsub.s32 %v522_v29, %v1672_v28  ;;  %vm964_vm5 = vcmask 326912   ;;  %vm971_vm6 = vcmask 392512   ;;  %vm978_vm7 = vcmask 458112   ;;  %p1439_p8 = scmp.ne.s32.totalorder %s1860_s10, %s1438_s30  ;;  %s1442_s4 = sshll.u32 %s1530_s15, 4  ;;  %s1443_s4 = int_to_ptr.vmem [resolvable:$false] %s1442_s4 }
  0x42   : > { %vm985_vm8 = vcmask 523712   ;;  %vm1018_vm9 = vcmask 523264   ;;  %vm1098_vm10 = vcmask 1043456   ;;  %vm1094_vm11 = vcmask 31744   ;;  %s1444_s5 = scalar_lea.vmem %s1443_s4, 32  ;;  %p1445_p6 = scmp.lt.s32.totalorder %s1860_s10, %s1443_s4 }
  0x43   : > { %238 = vadd.xlane.f32.xlu1 %v237_v11  ;;  %p1440_p11 = pnand %p1439_p8, %p1919_p9  ;;  %p1446_p13 = scmp.lt.s32.totalorder %s1444_s5, %s1438_s30 }
  0x45   : > { %241 = vadd.xlane.f32.xlu0 %v240_v16  ;;  %p1441_p0 = pneg %p1440_p11  ;;  %p1447_p2 = por %p1446_p13, %p1445_p6 }
  0x47   : > { %244 = vadd.xlane.f32.xlu1 %v243_v17  ;;  %p1448_p5 = pnand %p1447_p2, %p1441_p0 }
  0x49   : > { %247 = vadd.xlane.f32.xlu0 %v246_v22 }
  0x4b   : > { %250 = vadd.xlane.f32.xlu1 %v249_v23 }
  0xca   : > { %v230_v38 = vpop.xlane.xlu0 %229 }
  0xcb   : > { %v263_v41 = vrot.slane %v230_v38, %v1675_v30  ;;  %v267_v42 = vrot.slane %v230_v38, %v1678_v31  ;;  %v271_v43 = vrot.slane %v230_v38, %v1681_v32  ;;  %v275_v44 = vrot.slane %v230_v38, %v1684_v33 }
  0xcc   : > { %v236_v40 = vpop.xlane.xlu1 %235  ;;  %v279_v45 = vrot.slane %v230_v38, %v1687_v34  ;;  %v283_v46 = vrot.slane %v230_v38, %v1690_v35  ;;  %v287_v47 = vrot.slane %v230_v38, %v1693_v36  ;;  %v291_v48 = vrot.slane %v230_v38, %v1696_v37 }
  0xcd   : > { %v516_v49 = vcombine.low %v263_v41, %v267_v42  ;;  %v517_v50 = vcombine.low %v271_v43, %v275_v44  ;;  %v327_v51 = vrot.slane %v236_v40, %v1675_v30  ;;  %v331_v52 = vrot.slane %v236_v40, %v1678_v31 }
  0xce   : > { %v233_v53 = vpop.xlane.xlu0 %232  ;;  %v518_v54 = vcombine.low %v279_v45, %v283_v46  ;;  %v519_v55 = vcombine.low %v287_v47, %v291_v48  ;;  %v335_v56 = vrot.slane %v236_v40, %v1681_v32  ;;  %v339_v57 = vrot.slane %v236_v40, %v1684_v33 }
  0xcf   : > { %v526_v58 = vrot.slane %v516_v49, %v1699_v39  ;;  %v533_v59 = vrot.slane %v517_v50, %v1699_v39  ;;  %v295_v60 = vrot.slane %v233_v53, %v1675_v30  ;;  %v299_v61 = vrot.slane %v233_v53, %v1678_v31 }
  0xd0   : > { %v540_v62 = vrot.slane %v518_v54, %v1699_v39  ;;  %v547_v63 = vrot.slane %v519_v55, %v1699_v39  ;;  %v303_v0 = vrot.slane %v233_v53, %v1681_v32  ;;  %v307_v1 = vrot.slane %v233_v53, %v1684_v33  ;;  %v239_v14 = vpop.xlane.xlu1 %238 }
  0xd1   : > { %v548_v2 = vcombine.low %v526_v58, %v533_v59  ;;  %v311_v3 = vrot.slane %v233_v53, %v1687_v34  ;;  %v315_v4 = vrot.slane %v233_v53, %v1690_v35  ;;  %v319_v5 = vrot.slane %v233_v53, %v1693_v36 }
  0xd2   : > { %v549_v6 = vcombine.low %v540_v62, %v547_v63  ;;  %v323_v7 = vrot.slane %v233_v53, %v1696_v37  ;;  %v565_v8 = vcombine.low %v295_v60, %v299_v61  ;;  %v566_v9 = vcombine.low %v303_v0, %v307_v1  ;;  %v242_v50 = vpop.xlane.xlu0 %241 }
  0xd3   : > { %v556_v10 = vrot.slane %v548_v2, %v1699_v39  ;;  %v567_v11 = vcombine.low %v311_v3, %v315_v4  ;;  %v343_v12 = vrot.slane %v236_v40, %v1687_v34  ;;  %v347_v13 = vrot.slane %v236_v40, %v1690_v35 }
  0xd4   : > { %v563_v15 = vrot.slane %v549_v6, %v1699_v39  ;;  %v568_v16 = vcombine.low %v319_v5, %v323_v7  ;;  %v575_v17 = vrot.slane %v565_v8, %v1699_v39  ;;  %v582_v18 = vrot.slane %v566_v9, %v1699_v39  ;;  %v245_v3 = vpop.xlane.xlu1 %244 }
  0xd5   : > { %v589_v19 = vrot.slane %v567_v11, %v1699_v39  ;;  %v351_v20 = vrot.slane %v236_v40, %v1693_v36  ;;  %v355_v21 = vrot.slane %v236_v40, %v1696_v37  ;;  %v614_v22 = vcombine.low %v327_v51, %v331_v52 }
  0xd6   : > { %v564_v23 = vcombine.low %v556_v10, %v563_v15  ;;  %v596_v24 = vrot.slane %v568_v16, %v1699_v39  ;;  %v597_v26 = vcombine.low %v575_v17, %v582_v18  ;;  %v615_v27 = vcombine.low %v335_v56, %v339_v57 }
  0xd7   : > { %v616_v29 = vcombine.low %v343_v12, %v347_v13  ;;  %v617_v38 = vcombine.low %v351_v20, %v355_v21  ;;  %v624_v41 = vrot.slane %v614_v22, %v1699_v39  ;;  %v359_v42 = vrot.slane %v239_v14, %v1675_v30 }
  0xd8   : > { %909 = vperm.xlu0 %1402, %v564_v23   ;;  %v598_v43 = vcombine.low %v589_v19, %v596_v24  ;;  %v605_v44 = vrot.slane %v597_v26, %v1699_v39  ;;  %v631_v45 = vrot.slane %v615_v27, %v1699_v39  ;;  %v363_v40 = vrot.slane %v239_v14, %v1678_v31 }
  0xd9   : > { %v638_v46 = vrot.slane %v616_v29, %v1699_v39  ;;  %v645_v47 = vrot.slane %v617_v38, %v1699_v39  ;;  %v367_v48 = vrot.slane %v239_v14, %v1681_v32  ;;  %v371_v49 = vrot.slane %v239_v14, %v1684_v33  ;;  %v248_v38 = vpop.xlane.xlu0 %247 }
  0xda   : > { %v612_v51 = vrot.slane %v598_v43, %v1699_v39  ;;  %v646_v52 = vcombine.low %v624_v41, %v631_v45  ;;  %v375_v53 = vrot.slane %v239_v14, %v1687_v34  ;;  %v379_v54 = vrot.slane %v239_v14, %v1690_v35 }
  0xdb   : > { %v647_v55 = vcombine.low %v638_v46, %v645_v47  ;;  %v383_v56 = vrot.slane %v239_v14, %v1693_v36  ;;  %v387_v57 = vrot.slane %v239_v14, %v1696_v37  ;;  %v663_v58 = vcombine.low %v359_v42, %v363_v40 }
  0xdc   : > { %v613_v59 = vcombine.low %v605_v44, %v612_v51  ;;  %v654_v60 = vrot.slane %v646_v52, %v1699_v39  ;;  %v664_v61 = vcombine.low %v367_v48, %v371_v49  ;;  %v665_v62 = vcombine.low %v375_v53, %v379_v54 }
  0xdd   : > { %v661_v63 = vrot.slane %v647_v55, %v1699_v39  ;;  %v666_v0 = vcombine.low %v383_v56, %v387_v57  ;;  %v673_v1 = vrot.slane %v663_v58, %v1699_v39  ;;  %v391_v2 = vrot.slane %v242_v50, %v1675_v30 }
  0xde   : > { %912 = vperm.xlu1 %1403, %v613_v59   ;;  %v680_v4 = vrot.slane %v664_v61, %v1699_v39  ;;  %v687_v5 = vrot.slane %v665_v62, %v1699_v39  ;;  %v395_v6 = vrot.slane %v242_v50, %v1678_v31  ;;  %v399_v7 = vrot.slane %v242_v50, %v1681_v32 }
  0xdf   : > { %v662_v8 = vcombine.low %v654_v60, %v661_v63  ;;  %v694_v9 = vrot.slane %v666_v0, %v1699_v39  ;;  %v403_v10 = vrot.slane %v242_v50, %v1684_v33  ;;  %v407_v11 = vrot.slane %v242_v50, %v1687_v34  ;;  %v251_v60 = vpop.xlane.xlu1 %250 }
  0xe0   : > { %v695_v12 = vcombine.low %v673_v1, %v680_v4  ;;  %v411_v13 = vrot.slane %v242_v50, %v1690_v35  ;;  %v415_v14 = vrot.slane %v242_v50, %v1693_v36  ;;  %v419_v15 = vrot.slane %v242_v50, %v1696_v37 }
  0xe1   : > { %v696_v16 = vcombine.low %v687_v5, %v694_v9  ;;  %v712_v17 = vcombine.low %v391_v2, %v395_v6  ;;  %v713_v18 = vcombine.low %v399_v7, %v403_v10  ;;  %v423_v19 = vrot.slane %v245_v3, %v1675_v30 }
  0xe2   : > { %915 = vperm.xlu1 %1403, %v662_v8   ;;  %v703_v20 = vrot.slane %v695_v12, %v1699_v39  ;;  %v714_v21 = vcombine.low %v407_v11, %v411_v13  ;;  %v715_v22 = vcombine.low %v415_v14, %v419_v15  ;;  %v427_v23 = vrot.slane %v245_v3, %v1678_v31 }
  0xe3   : > { %v710_v24 = vrot.slane %v696_v16, %v1699_v39  ;;  %v722_v26 = vrot.slane %v712_v17, %v1699_v39  ;;  %v729_v27 = vrot.slane %v713_v18, %v1699_v39  ;;  %v431_v29 = vrot.slane %v245_v3, %v1681_v32 }
  0xe4   : > { %v736_v41 = vrot.slane %v714_v21, %v1699_v39  ;;  %v743_v42 = vrot.slane %v715_v22, %v1699_v39  ;;  %v435_v43 = vrot.slane %v245_v3, %v1684_v33  ;;  %v439_v44 = vrot.slane %v245_v3, %v1687_v34 }
  0xe5   : > { %v711_v45 = vcombine.low %v703_v20, %v710_v24  ;;  %v744_v40 = vcombine.low %v722_v26, %v729_v27  ;;  %v443_v46 = vrot.slane %v245_v3, %v1690_v35  ;;  %v447_v47 = vrot.slane %v245_v3, %v1693_v36 }
  0xe6   : > { %v745_v48 = vcombine.low %v736_v41, %v743_v42  ;;  %v451_v49 = vrot.slane %v245_v3, %v1696_v37  ;;  %v761_v50 = vcombine.low %v423_v19, %v427_v23  ;;  %v762_v51 = vcombine.low %v431_v29, %v435_v43 }
  0xe7   : > { %918 = vperm.xlu1 %1403, %v711_v45   ;;  %v752_v52 = vrot.slane %v744_v40, %v1699_v39  ;;  %v763_v53 = vcombine.low %v439_v44, %v443_v46  ;;  %v455_v54 = vrot.slane %v248_v38, %v1675_v30  ;;  %v459_v55 = vrot.slane %v248_v38, %v1678_v31 }
  0xe8   : > { %v759_v56 = vrot.slane %v745_v48, %v1699_v39  ;;  %v764_v57 = vcombine.low %v447_v47, %v451_v49  ;;  %v771_v58 = vrot.slane %v761_v50, %v1699_v39  ;;  %v778_v59 = vrot.slane %v762_v51, %v1699_v39  ;;  %v1010_v49 = vld [vmem:[%s1909_s1] sm:$0xff]  ;;  %v1011_v50 = vld [vmem:[%s1909_s1 + $0x8] sm:$0xff] }
  0xe9   : > { %v785_v61 = vrot.slane %v763_v53, %v1699_v39  ;;  %v463_v62 = vrot.slane %v248_v38, %v1681_v32  ;;  %v467_v63 = vrot.slane %v248_v38, %v1684_v33  ;;  %v471_v0 = vrot.slane %v248_v38, %v1687_v34  ;;  %v1012_v53 = vld [vmem:[%s1909_s1 + $0x10] sm:$0xff] }
  0xea   : > { %v760_v1 = vcombine.low %v752_v52, %v759_v56  ;;  %v792_v2 = vrot.slane %v764_v57, %v1699_v39  ;;  %v793_v3 = vcombine.low %v771_v58, %v778_v59  ;;  %v475_v4 = vrot.slane %v248_v38, %v1690_v35  ;;  %v1015_v57 = vld [vmem:[%s1909_s1 + $0x28] sm:$0xff]  ;;  %v1016_v59 = vld [vmem:[%s1909_s1 + $0x30] sm:$0xff] }
  0xeb   : > { %v479_v5 = vrot.slane %v248_v38, %v1693_v36  ;;  %v483_v6 = vrot.slane %v248_v38, %v1696_v37  ;;  %v810_v7 = vcombine.low %v455_v54, %v459_v55  ;;  %v811_v8 = vcombine.low %v463_v62, %v467_v63  ;;  %v1013_v54 = vld [vmem:[%s1909_s1 + $0x18] sm:$0xff]  ;;  %v1014_v55 = vld [vmem:[%s1909_s1 + $0x20] sm:$0xff] }
  0xec   : > { %921 = vperm.xlu1 %1403, %v760_v1   ;;  %v794_v9 = vcombine.low %v785_v61, %v792_v2  ;;  %v801_v10 = vrot.slane %v793_v3, %v1699_v39  ;;  %v812_v11 = vcombine.low %v471_v0, %v475_v4  ;;  %v487_v12 = vrot.slane %v251_v60, %v1675_v30 }
  0xed   : > { %v813_v13 = vcombine.low %v479_v5, %v483_v6  ;;  %v820_v14 = vrot.slane %v810_v7, %v1699_v39  ;;  %v827_v15 = vrot.slane %v811_v8, %v1699_v39  ;;  %v491_v16 = vrot.slane %v251_v60, %v1678_v31 }
  0xee   : > { %v808_v17 = vrot.slane %v794_v9, %v1699_v39  ;;  %v834_v18 = vrot.slane %v812_v11, %v1699_v39  ;;  %v495_v19 = vrot.slane %v251_v60, %v1681_v32  ;;  %v499_v20 = vrot.slane %v251_v60, %v1684_v33 }
  0xef   : > { %v841_v21 = vrot.slane %v813_v13, %v1699_v39  ;;  %v842_v22 = vcombine.low %v820_v14, %v827_v15  ;;  %v503_v30 = vrot.slane %v251_v60, %v1687_v34  ;;  %v507_v23 = vrot.slane %v251_v60, %v1690_v35 }
  0xf0   : > { %v809_v24 = vcombine.low %v801_v10, %v808_v17  ;;  %v511_v26 = vrot.slane %v251_v60, %v1693_v36  ;;  %v515_v31 = vrot.slane %v251_v60, %v1696_v37  ;;  %v859_v27 = vcombine.low %v487_v12, %v491_v16  ;;  %v1017_v60 = vld [vmem:[%s1909_s1 + $0x38] sm:$0xff] }
  0xf1   : > { %v843_v29 = vcombine.low %v834_v18, %v841_v21  ;;  %v850_v38 = vrot.slane %v842_v22, %v1699_v39  ;;  %v860_v41 = vcombine.low %v495_v19, %v499_v20  ;;  %v861_v32 = vcombine.low %v503_v30, %v507_v23 }
  0xf2   : > { %924 = vperm.xlu1 %1403, %v809_v24   ;;  %v862_v33 = vcombine.low %v511_v26, %v515_v31  ;;  %v869_v42 = vrot.slane %v859_v27, %v1699_v39  ;;  %v1527_v48 = vmov 0.0   ;;  %v1322_v51 = vpack.c.bf16 %v1011_v50, %v1010_v49 }
  0xf3   : > { %v857_v43 = vrot.slane %v843_v29, %v1699_v39  ;;  %v876_v34 = vrot.slane %v860_v41, %v1699_v39  ;;  %v883_v35 = vrot.slane %v861_v32, %v1699_v39  ;;  %210 = vst.msk [vmem:[#allocation2] sm:$0x1] %vm209_vm0, %v1527_v48  ;;  %1316 = vmatprep.subr.mxu1 %v1527_v48  ;;  %v1528_v52 = vmov 0.0|0.0  }
  0xf4   : > { %v890_v36 = vrot.slane %v862_v33, %v1699_v39  ;;  %1321 = vmatprep.subr.bf16.mxu0 %v1528_v52  ;;  %v1325_v56 = vpack.c.bf16 %v1013_v54, %v1012_v53  ;;  %v1328_v58 = vpack.c.bf16 %v1015_v57, %v1014_v55  ;;  %1313 = vmatprep.mubr.msk.f32.mxu0 %vm1529_vm1, %v1527_v48  ;;  %v933_v1 = vand.u32 127, %v260_v25 }
  0xf5   : > { %v858_v44 = vcombine.low %v850_v38, %v857_v43  ;;  %v891_v37 = vcombine.low %v869_v42, %v876_v34  ;;  %1323 = vmatpush3.bf16.msra.mxu0 %v1322_v51  ;;  %1318 = vmatprep.mubr.msk.f32.mxu1 %vm1529_vm1, %v1527_v48  ;;  %v1331_v61 = vpack.c.bf16 %v1017_v60, %v1016_v59 }
  0xf6   : > { %v892_v45 = vcombine.low %v883_v35, %v890_v36  ;;  %1324 = vmatprep.subr.bf16.mxu0 %v1528_v52  ;;  %v938_v3 = vadd.s32 4294967288, %v933_v1  ;;  %v945_v4 = vadd.s32 4294967280, %v933_v1  ;;  %v952_v5 = vadd.s32 4294967272, %v933_v1 }
  0xf7   : > { %927 = vperm.xlu1 %1403, %v858_v44   ;;  %v899_v40 = vrot.slane %v891_v37, %v1699_v39  ;;  %v959_v6 = vadd.s32 4294967264, %v933_v1  ;;  %v966_v8 = vadd.s32 4294967256, %v933_v1  ;;  %v973_v11 = vadd.s32 4294967248, %v933_v1 }
  0xf8   : > { %v906_v46 = vrot.slane %v892_v45, %v1699_v39  ;;  %v941_v7 = vsub.s32 %v938_v3, %v1672_v28  ;;  %v948_v9 = vsub.s32 %v945_v4, %v1672_v28  ;;  %v936_v12 = vsub.s32 %v933_v1, %v1672_v28  ;;  %v1093_v45 = vld [vmem:[%s1910_s2] sm:$0xf] }
  0xf9   : > { %1326 = vmatpush3.bf16.msra.mxu0 %v1325_v56  ;;  %v955_v13 = vsub.s32 %v952_v5, %v1672_v28  ;;  %v962_v15 = vsub.s32 %v959_v6, %v1672_v28  ;;  %v969_v16 = vsub.s32 %v966_v8, %v1672_v28  ;;  %v980_v17 = vadd.s32 4294967240, %v933_v1  ;;  %1317 = vmatpush3.msk.msra.mxu1 %vm1098_vm10, %v1093_v45 }
  0xfa   : > { %v907_v47 = vcombine.low %v899_v40, %v906_v46  ;;  %1327 = vmatprep.subr.bf16.mxu0 %v1528_v52  ;;  %v976_v19 = vsub.s32 %v973_v11, %v1672_v28  ;;  %v211_v35 = vld [vmem:[#allocation2] sm:$0x1] }
  0xfb   : > { %v983_v26 = vsub.s32 %v980_v17, %v1672_v28 }
  0xfc   : > { %930 = vperm.xlu1 %1403, %v907_v47  }
  0xfd   : > { %1329 = vmatpush3.bf16.msra.mxu0 %v1328_v58 }
  0xfe   : > { %1330 = vmatprep.subr.bf16.mxu0 %v1528_v52 }
 0x101   : > { %1332 = vmatpush3.bf16.msra.mxu0 %v1331_v61 }
 0x157   : > { %v910_v14 = vpop.permute.xlu0 %909 }
 0x158   : > { %v937_v20 = vrot.slane %v910_v14, %v936_v12 }
 0x15d   : > { %v913_v62 = vpop.permute.xlu1 %912 }
 0x15e   : > { %v942_v25 = vrot.slane %v913_v62, %v941_v7 }
 0x160   : > { %v944_v23 = vsel %vm943_vm2, %v942_v25, %v937_v20 }
 0x161   : > { %v916_v63 = vpop.permute.xlu1 %915 }
 0x162   : > { %v949_v18 = vrot.slane %v916_v63, %v948_v9 }
 0x164   : > { %v951_v31 = vsel %vm950_vm3, %v949_v18, %v944_v23 }
 0x166   : > { %v919_v0 = vpop.permute.xlu1 %918 }
 0x167   : > { %v956_v21 = vrot.slane %v919_v0, %v955_v13 }
 0x169   : > { %v958_v29 = vsel %vm957_vm4, %v956_v21, %v951_v31 }
 0x16b   : > { %v922_v2 = vpop.permute.xlu1 %921 }
 0x16c   : > { %v963_v30 = vrot.slane %v922_v2, %v962_v15 }
 0x16e   : > { %v965_v38 = vsel %vm964_vm5, %v963_v30, %v958_v29 }
 0x171   : > { %v925_v10 = vpop.permute.xlu1 %924 }
 0x172   : > { %v970_v24 = vrot.slane %v925_v10, %v969_v16 }
 0x174   : > { %v972_v32 = vsel %vm971_vm6, %v970_v24, %v965_v38 }
 0x176   : > { %v928_v22 = vpop.permute.xlu1 %927 }
 0x177   : > { %v977_v27 = vrot.slane %v928_v22, %v976_v19 }
 0x179   : > { %v979_v42 = vsel %vm978_vm7, %v977_v27, %v972_v32 }
 0x17b   : > { %v931_v41 = vpop.permute.xlu1 %930 }
 0x17c   : > { %v984_v33 = vrot.slane %v931_v41, %v983_v26 }
 0x17e   : > { %v986_v43 = vsel %vm985_vm8, %v984_v33, %v979_v42 }
 0x17f   : > { %v993_v34 = vrot.slane %v986_v43, %v1699_v39 }
 0x181   : > { %v1000_v36 = vrot.slane %v993_v34, %v1699_v39 }
 0x183   : > { %v1002_v44 = vadd.f32 %v1000_v36, %v211_v35 }
 0x185   : > { %1004 = vst.msk [vmem:[#allocation2] sm:$0x1] %vm209_vm0, %v1002_v44 }
 0x18c   : > { %v1008_v28 = vld [vmem:[#allocation2] sm:$0x1] }
 0x18d   : > { %v1009_v37 = vmul.f32 0.00390625, %v1008_v28 }
 0x18f   : > { %1314 = vmatmul.mubr.msk.f32.vlgmr.msra.gmra.mrb[0].mxu0 %vm1018_vm9, %v1009_v37 }
 0x262   : > { %v1088_v40 = vpop.f32.mrb[0].mxu0 }
 0x263   : > { %v1092_v46 = vmax.f32 %v1088_v40, 0.0  ;;  %v1315_v47 = vpop.f32.mrb[1].mxu0 }
 0x265   : > { %1319 = vmatmul.mubr.msk.f32.vlgmr.msra.gmra.mrb[0].mxu1 %vm1094_vm11, %v1092_v46 }
 0x338   : > { %v1168_v39 = vpop.f32.mrb[0].mxu1 }
 0x339   : > { %v1281_v48 = vmul.f32 -1.442695, %v1168_v39  ;;  %v1320_v49 = vpop.f32.mrb[1].mxu1 }
 0x33b   : > { %1404 = vpow2.f32 %v1281_v48 }
 0x345   : > { %v1405_v50 = vpop.eup %1404 }
 0x346   : > { %v1175_v51 = vadd.f32 1.0, %v1405_v50 }
 0x348   : > { %1406 = vrcp.f32 %v1175_v51 }
 0x352   : > { %v1407_v52 = vpop.eup %1406 }
 0x353   : > { %1178 = vst.msk [vmem:[%s203_s9] sm:$0x1] %vm209_vm0, %v1407_v52 }
 0x354   : > { %1451 = shalt.err (!%p1448_p5)
}
 0x355   : > { %s1452_s11 = scalar_lea.hbm %s1858_s28, 16  ;;  %s1456_s19 = scalar_lea.hbm %s1911_s3, 32 }
 0x356   : > { %p1453_p4 = scmp.ne.s32.totalorder %s1858_s28, %s1452_s11  ;;  %p1457_p12 = scmp.lt.u32.totalorder %s1858_s28, %s1911_s3 }
 0x357   : > { %p1458_p1 = scmp.lt.u32.totalorder %s1456_s19, %s1452_s11  ;;  %p1460_p8 = scmp.lt.u32.totalorder %s1452_s11, %s1858_s28 }
 0x358   : > { %p1454_p7 = pnand %p1453_p4, %p1919_p9 }
 0x359   : > { %p1459_p3 = por %p1458_p1, %p1457_p12 }
 0x35a   : > { %p1455_p10 = pneg %p1454_p7 }
 0x35b   : > { %p1461_p11 = por %p1460_p8, %p1459_p3 }
 0x35d   : > { %p1462_p0 = pnand %p1461_p11, %p1455_p10 }
 0x35f   : > { %1465 = shalt.err (!%p1462_p0)
}
 0x360   : > { %1335 = dma.vmem_to_hbm [thread:$0]  (%p1919_p9), %s1860_s10, 16, %s1858_s28, %s1180_s29  }
 0x361 PF: > { %s1204_s6 = sand.u32 1, %s1500_s12   ;;  %p1920_p6 = scmp.ne.s32.totalorder %s1916_s27, 0 }
 0x362   : > { %p1921_p13 = scmp.ge.s32.totalorder %s1520_s17, 2  ;;  %s1205_s8 = scalar_lea.sflag [#allocation5], %s1204_s6 }
 0x364   : > { %p1342_p2 = pnand %p1921_p13, %p1920_p6 }
 0x366   : > { %1495 = dma.done.wait (!%p1342_p2), %s1205_s8, 16  }
 0x367   : > { %1497 = vsyncadd (!%p1342_p2), %s1205_s8, 4294967280  ;;  %s19_s17 = sadd.s32 1, %s1520_s17   ;;  %s1922_s12 = smov %s1504_s13 }
 0x368   : > { %p16_p5 = scmp.ge.s32.totalorder %s19_s17, 4   ;;  %s1923_s13 = smov %s1508_s14 }
 0x369   : > { %s1924_s14 = smov %s1607_s26  ;;  %s1925_s15 = smov %s1516_s16 }
 0x36a   : > { %s1926_s16 = smov %s1928_s20  ;;  %18 = sbr.rel (!%p16_p5) target bundleno = 6 (0x6), region = 85 }
 0x371   :  { %1209 = vsyncpa [#allocation4], 1 }
 0x372   :  { %1211 = vsyncpa [#allocation4 + $0x1], 1 }
 0x373   :  { %1212 = vsyncpa [#allocation5], 1 }
 0x374   :  { %1214 = vsyncpa [#allocation5 + $0x1], 1 }

</bundles_post_ra>
